<compile_context>
chip_gen: v7x
topology: tpu7x:2x2x1
jax: 0.10.0
libtpu: 0.0.40
codegen_flags: <defaults>
</compile_context>

<pallas_src>
import jax
import jax.numpy as jnp
from jax.experimental import pallas as pl
from jax.experimental.pallas import tpu as pltpu


def _round_up(x, m):
    return ((x + m - 1) // m) * m


def _choose_row_tile(N, tm_max):
    """Row-tile size: multiple of 16 (bf16 sublane packing), 128-aligned for
    larger problems, and split into >=2 tiles for big N so v7x's two
    TensorCores both get work via the "parallel" grid axis."""
    if N <= 256:
        return max(16, min(_round_up(N, 16), _round_up(tm_max, 16)))
    t = min(tm_max, _round_up(pl.cdiv(N, 2), 128))
    return max(128, _round_up(t, 128))


def _mlp_kernel(x_ref, w1_ref, b1_ref, w2_ref, b2_ref, o_ref):
    # x_ref : (tm, dim_in)       bf16 tile of node features
    # w1_ref: (dim_in, h_pad)    bf16, resident across the grid
    # b1_ref: (1, h_pad)         f32
    # w2_ref: (h_pad, c_pad)     bf16, resident (zero-padded, lane-dense)
    # b2_ref: (1, c_pad)         f32
    # o_ref : (tm, c_pad)        f32, lane-dense (c_pad % 128 == 0 -> unmasked vst)
    h = jnp.dot(x_ref[...], w1_ref[...], preferred_element_type=jnp.float32)
    h = jnp.maximum(h + b1_ref[...], 0.0)                      # f32 bias + ReLU (VPU)
    o = jnp.dot(h.astype(w2_ref.dtype), w2_ref[...],
                preferred_element_type=jnp.float32)
    o_ref[...] = (o + b2_ref[...]).astype(o_ref.dtype)


def prepare_params(w1, b1, w2, b2):
    """One-time weight prep, hoisted out of the per-forward path.

    w1: (dim_hid, dim_in); b1: (dim_hid,); w2: (num_class, dim_hid); b2: (num_class,).
    Transposes to (in, out), casts to bf16, zero-pads dim_hid and num_class up
    to multiples of 128 (lane-dense hidden + output)."""
    dim_hid, dim_in = w1.shape
    num_class = w2.shape[0]
    h_pad = _round_up(dim_hid, 128)
    c_pad = _round_up(num_class, 128)

    w1_t = jnp.zeros((dim_in, h_pad), jnp.bfloat16).at[:, :dim_hid].set(
        w1.T.astype(jnp.bfloat16))
    b1_p = jnp.zeros((1, h_pad), jnp.float32).at[:, :dim_hid].set(
        b1.astype(jnp.float32))
    w2_t = jnp.zeros((h_pad, c_pad), jnp.bfloat16).at[:dim_hid, :num_class].set(
        w2.T.astype(jnp.bfloat16))
    b2_p = jnp.zeros((1, c_pad), jnp.float32).at[:, :num_class].set(
        b2.astype(jnp.float32))

    # Materialize once so every later forward sees device-resident constants.
    w1_t, b1_p, w2_t, b2_p = jax.block_until_ready((w1_t, b1_p, w2_t, b2_p))
    return dict(w1_t=w1_t, b1=b1_p, w2_t=w2_t, b2=b2_p,
                dim_in=dim_in, dim_hid=dim_hid, num_class=num_class,
                h_pad=h_pad, c_pad=c_pad)


def node_classification_forward(x, params, *, tm=512, return_padded=False):
    """x: (N, dim_in) f32/bf16.  Returns (N, num_class) f32 logits
    (or the lane-padded (N, c_pad) buffer if return_padded=True)."""
    N, dim_in = x.shape
    assert dim_in == params["dim_in"]
    h_pad = params["h_pad"]
    c_pad = params["c_pad"]
    dim_hid = params["dim_hid"]
    num_class = params["num_class"]

    tm_eff = _choose_row_tile(N, tm)
    grid = (pl.cdiv(N, tm_eff),)

    # bf16 input stream: halves HBM bytes of the dominant x read, native MXU path.
    x_b = x.astype(jnp.bfloat16)

    cost = pl.CostEstimate(
        flops=2 * N * (dim_in * dim_hid + dim_hid * num_class),
        transcendentals=0,
        bytes_accessed=(N * dim_in * 2
                        + params["w1_t"].size * 2 + params["w2_t"].size * 2
                        + params["b1"].size * 4 + params["b2"].size * 4
                        + N * c_pad * 4),
    )

    out = pl.pallas_call(
        _mlp_kernel,
        out_shape=jax.ShapeDtypeStruct((N, c_pad), jnp.float32),
        grid_spec=pltpu.PrefetchScalarGridSpec(
            num_scalar_prefetch=0,
            grid=grid,
            in_specs=[
                pl.BlockSpec((tm_eff, dim_in), lambda i: (i, 0)),    # x tile
                pl.BlockSpec((dim_in, h_pad), lambda i: (0, 0)),     # W1 (resident)
                pl.BlockSpec((1, h_pad), lambda i: (0, 0)),          # b1
                pl.BlockSpec((h_pad, c_pad), lambda i: (0, 0)),      # W2 (resident)
                pl.BlockSpec((1, c_pad), lambda i: (0, 0)),          # b2
            ],
            out_specs=pl.BlockSpec((tm_eff, c_pad), lambda i: (i, 0)),
        ),
        compiler_params=pltpu.CompilerParams(
            dimension_semantics=("parallel",),   # row tiles shard across TCs on v7x
        ),
        cost_estimate=cost,
    )(x_b, params["w1_t"], params["b1"], params["w2_t"], params["b2"])

    if return_padded:
        return out                     # downstream consumers can mask cols >= num_class
    return out[:, :num_class]


def _init_linear(key, out_features, in_features):
    # Deterministic PyTorch-style uniform init (synthetic).
    kw, kb = jax.random.split(key)
    bound = 1.0 / (in_features ** 0.5)
    w = jax.random.uniform(kw, (out_features, in_features),
                           minval=-bound, maxval=bound, dtype=jnp.float32)
    b = jax.random.uniform(kb, (out_features,),
                           minval=-bound, maxval=bound, dtype=jnp.float32)
    return w, b


def _ref_bf16(x, w1, b1, w2, b2):
    """bf16-matched reference (same casts, f32 accumulation)."""
    h = jnp.dot(x.astype(jnp.bfloat16), w1.T.astype(jnp.bfloat16),
                preferred_element_type=jnp.float32) + b1
    h = jnp.maximum(h, 0.0)
    return jnp.dot(h.astype(jnp.bfloat16), w2.T.astype(jnp.bfloat16),
                   preferred_element_type=jnp.float32) + b2


if __name__ == "__main__":
    # Small shapes consistent with the module: N nodes, dim_in -> dim_hid -> num_class.
    N, dim_in, dim_hid, num_class = 128, 32, 64, 16

    key = jax.random.PRNGKey(0)
    kx, k1, k2 = jax.random.split(key, 3)

    x = jax.random.normal(kx, (N, dim_in), dtype=jnp.float32)
    w1, b1 = _init_linear(k1, dim_hid, dim_in)     # fc1: (dim_hid, dim_in), (dim_hid,)
    w2, b2 = _init_linear(k2, num_class, dim_hid)  # fc2: (num_class, dim_hid), (num_class,)

    params = prepare_params(w1, b1, w2, b2)        # one-time hoisted weight prep

    out = node_classification_forward(x, params)
    out = jax.block_until_ready(out)
    assert out.shape == (N, num_class)

    # Reference 1: exact PyTorch-module math in f32 (bf16 inputs -> loose tol).
    ref_f32 = jnp.maximum(x @ w1.T + b1, 0.0) @ w2.T + b2
    assert jnp.allclose(out, ref_f32, atol=5e-2, rtol=5e-2)

    # Reference 2: bf16-matched math -> tight tol.
    assert jnp.allclose(out, _ref_bf16(x, w1, b1, w2, b2), atol=1e-3, rtol=1e-3)

    # Tail-block path (no wrapper-side row padding): N not a multiple of the tile.
    N2 = 200
    x2 = jax.random.normal(jax.random.PRNGKey(1), (N2, dim_in), dtype=jnp.float32)
    out2 = jax.block_until_ready(node_classification_forward(x2, params, tm=128))
    assert out2.shape == (N2, num_class)
    assert jnp.allclose(out2, _ref_bf16(x2, w1, b1, w2, b2), atol=1e-3, rtol=1e-3)

    print("KERNEL_OK")
</pallas_src>

<mosaic_0001>
module attributes {stable_mosaic.version = 11 : i64} {
  func.func @_mlp_kernel(%arg0: i32, %arg1: memref<128x32xbf16, #tpu.memory_space<vmem>>, %arg2: memref<32x128xbf16, #tpu.memory_space<vmem>>, %arg3: memref<1x128xf32, #tpu.memory_space<vmem>>, %arg4: memref<128x128xbf16, #tpu.memory_space<vmem>>, %arg5: memref<1x128xf32, #tpu.memory_space<vmem>>, %arg6: memref<128x128xf32, #tpu.memory_space<vmem>>) attributes {dimension_semantics = [#tpu.dimension_semantics<parallel>], iteration_bounds = array<i64: 1>, scalar_prefetch = 0 : i64, scratch_operands = 0 : i64, tpu.core_type = #tpu.core_type<tc>, window_params = [{transform_indices = @transform_0, window_bounds = array<i64: 128, 32>}, {pipeline_mode = #tpu.pipeline_mode<synchronous>, transform_indices = @transform_1, window_bounds = array<i64: 32, 128>}, {pipeline_mode = #tpu.pipeline_mode<synchronous>, transform_indices = @transform_2, window_bounds = array<i64: 1, 128>}, {pipeline_mode = #tpu.pipeline_mode<synchronous>, transform_indices = @transform_3, window_bounds = array<i64: 128, 128>}, {pipeline_mode = #tpu.pipeline_mode<synchronous>, transform_indices = @transform_4, window_bounds = array<i64: 1, 128>}, {transform_indices = @transform_5, window_bounds = array<i64: 128, 128>}]} {
    %c0 = arith.constant 0 : index
    %c0_0 = arith.constant 0 : index
    %0 = vector.load %arg1[%c0, %c0_0] : memref<128x32xbf16, #tpu.memory_space<vmem>>, vector<128x32xbf16>
    %c0_1 = arith.constant 0 : index
    %c0_2 = arith.constant 0 : index
    %1 = vector.load %arg2[%c0_1, %c0_2] : memref<32x128xbf16, #tpu.memory_space<vmem>>, vector<32x128xbf16>
    %cst = arith.constant dense<0.000000e+00> : vector<128x128xf32>
    %2 = tpu.matmul %0, %1, %cst {dimension_numbers = #tpu.dot_dimension_numbers<[1], [0], [0], [1], [0, 0, 1, 1], [], []>} : vector<128x32xbf16>, vector<32x128xbf16>, vector<128x128xf32> -> vector<128x128xf32>
    %c0_3 = arith.constant 0 : index
    %c0_4 = arith.constant 0 : index
    %3 = vector.load %arg3[%c0_3, %c0_4] : memref<1x128xf32, #tpu.memory_space<vmem>>, vector<1x128xf32>
    %4 = vector.broadcast %3 : vector<1x128xf32> to vector<128x128xf32>
    %5 = arith.addf %2, %4 : vector<128x128xf32>
    %cst_5 = arith.constant 0.000000e+00 : f32
    %6 = vector.broadcast %cst_5 : f32 to vector<128x128xf32>
    %7 = arith.maximumf %5, %6 : vector<128x128xf32>
    %8 = arith.truncf %7 : vector<128x128xf32> to vector<128x128xbf16>
    %c0_6 = arith.constant 0 : index
    %c0_7 = arith.constant 0 : index
    %9 = vector.load %arg4[%c0_6, %c0_7] : memref<128x128xbf16, #tpu.memory_space<vmem>>, vector<128x128xbf16>
    %cst_8 = arith.constant dense<0.000000e+00> : vector<128x128xf32>
    %10 = tpu.matmul %8, %9, %cst_8 {dimension_numbers = #tpu.dot_dimension_numbers<[1], [0], [0], [1], [0, 0, 1, 1], [], []>} : vector<128x128xbf16>, vector<128x128xbf16>, vector<128x128xf32> -> vector<128x128xf32>
    %c0_9 = arith.constant 0 : index
    %c0_10 = arith.constant 0 : index
    %11 = vector.load %arg5[%c0_9, %c0_10] : memref<1x128xf32, #tpu.memory_space<vmem>>, vector<1x128xf32>
    %12 = vector.broadcast %11 : vector<1x128xf32> to vector<128x128xf32>
    %13 = arith.addf %10, %12 : vector<128x128xf32>
    %c0_11 = arith.constant 0 : index
    %c0_12 = arith.constant 0 : index
    %14 = vector.load %arg6[%c0_11, %c0_12] : memref<128x128xf32, #tpu.memory_space<vmem>>, vector<128x128xf32>
    tpu.vector_store %arg6[%c0_11, %c0_12], %13 {strides = array<i32>} : memref<128x128xf32, #tpu.memory_space<vmem>>, vector<128x128xf32>,
    return
  }
  func.func @transform_0(%arg0: i32) -> (i32, i32) {
    %c0_i32 = arith.constant 0 : i32
    %c0_i32_0 = arith.constant 0 : i32
    return %arg0, %c0_i32 : i32, i32
  }
  func.func @transform_1(%arg0: i32) -> (i32, i32) {
    %c0_i32 = arith.constant 0 : i32
    %c0_i32_0 = arith.constant 0 : i32
    %c0_i32_1 = arith.constant 0 : i32
    return %c0_i32, %c0_i32_0 : i32, i32
  }
  func.func @transform_2(%arg0: i32) -> (i32, i32) {
    %c0_i32 = arith.constant 0 : i32
    %c0_i32_0 = arith.constant 0 : i32
    %c0_i32_1 = arith.constant 0 : i32
    return %c0_i32, %c0_i32_0 : i32, i32
  }
  func.func @transform_3(%arg0: i32) -> (i32, i32) {
    %c0_i32 = arith.constant 0 : i32
    %c0_i32_0 = arith.constant 0 : i32
    %c0_i32_1 = arith.constant 0 : i32
    return %c0_i32, %c0_i32_0 : i32, i32
  }
  func.func @transform_4(%arg0: i32) -> (i32, i32) {
    %c0_i32 = arith.constant 0 : i32
    %c0_i32_0 = arith.constant 0 : i32
    %c0_i32_1 = arith.constant 0 : i32
    return %c0_i32, %c0_i32_0 : i32, i32
  }
  func.func @transform_5(%arg0: i32) -> (i32, i32) {
    %c0_i32 = arith.constant 0 : i32
    %c0_i32_0 = arith.constant 0 : i32
    return %arg0, %c0_i32 : i32, i32
  }
}

</mosaic_0001>

<bundles_post_ra>
// kernel: tpu_custom_call.1
= control target key start
LH: loop header
LB: loop body
LE: loop exit
PB: predicated region body
PF: predicated region fallthrough
CT: control target
= control target key end

     0   :  { %vm101_vm0 = vcmask 261120   ;;  %s727_s0 = inlined_call_operand.vmem [shape: bf16[128,32], index: 0, kind: input, shape index: {}]   ;;  %s728_s1 = inlined_call_operand.vmem [shape: bf16[32,128], index: 1, kind: input, shape index: {}]   ;;  %s729_s2 = inlined_call_operand.vmem [shape: f32[1,128], index: 2, kind: input, shape index: {}]   ;;  %s730_s3 = inlined_call_operand.vmem [shape: bf16[128,128], index: 3, kind: input, shape index: {}]   ;;  %s731_s4 = inlined_call_operand.vmem [shape: f32[1,128], index: 4, kind: input, shape index: {}]   ;;  %s732_s5 = inlined_call_operand.hbm [shape: f32[128,128], index: 5, kind: output, shape index: {}]  }
   0x1   :  { %v572_v0 = vld [vmem:[%s728_s1] sm:$0xff]   ;;  %v573_v1 = vld [vmem:[%s728_s1 + $0x8] sm:$0xff]   ;;  %v576_v4 = vld [vmem:[%s727_s0 + $0x10] sm:$0xff]  }
   0x2   :  { %501 = vmatprep.subr.bf16.mxu0 %v572_v0  ;;  %v574_v2 = vld [vmem:[%s727_s0] sm:$0xff]   ;;  %v575_v3 = vld [vmem:[%s727_s0 + $0x8] sm:$0xff]   ;;  %v577_v7 = vld [vmem:[%s727_s0 + $0x18] sm:$0xff]  }
   0x3   :  { %502 = vmatpush3.bf16.msra.mxu0 %v572_v0  ;;  %505 = vmatprep.mubr.msk.bf16.mxu0 %vm101_vm0, %v574_v2  ;;  %v582_v5 = vld [vmem:[%s730_s3] sm:$0xff]   ;;  %v583_v6 = vld [vmem:[%s730_s3 + $0x8] sm:$0xff]   ;;  %v584_v8 = vld [vmem:[%s730_s3 + $0x10] sm:$0xff]  }
   0x4   :  { %503 = vmatprep.subr.bf16.mxu0 %v573_v1  ;;  %553 = vmatprep.subr.bf16.mxu1 %v582_v5  ;;  %v578_v9 = vld [vmem:[%s727_s0 + $0x20] sm:$0xff]  }
   0x5   :  { %561 = vmatpush3.bf16.msra.mxu1 %v582_v5 }
   0x6   :  { %554 = vmatprep.subr.bf16.mxu1 %v583_v6 }
   0x7   :  { %504 = vmatpush3.bf16.msra.mxu0 %v573_v1 }
   0x8   :  { %521 = vmatprep.subr.bf16.mxu0 %v582_v5 }
   0x9   :  { %562 = vmatpush3.bf16.msra.mxu1 %v583_v6 }
   0xa   :  { %506 = vmatmul.mubr.msk.bf16.vlgmr.msra.gmra.mrb[0].mxu0 %vm101_vm0, %v575_v3 }
   0xb   :  { %509 = vmatprep.mubr.msk.bf16.mxu0 %vm101_vm0, %v576_v4  ;;  %522 = vmatpush3.bf16.msra.mxu0 %v582_v5 }
   0xc   :  { %523 = vmatprep.subr.bf16.mxu0 %v583_v6 }
   0xf   :  { %524 = vmatpush3.bf16.msra.mxu0 %v583_v6 }
  0x10   :  { %10 = vsyncpa [#allocation3], 0  ;;  %525 = vmatprep.subr.bf16.mxu0 %v584_v8  ;;  %v585_v10 = vld [vmem:[%s730_s3 + $0x18] sm:$0xff]   ;;  %555 = vmatprep.subr.bf16.mxu1 %v584_v8  ;;  %v579_v11 = vld [vmem:[%s727_s0 + $0x28] sm:$0xff]  }
  0x11   :  { %563 = vmatpush3.bf16.msra.mxu1 %v584_v8  ;;  %v586_v12 = vld [vmem:[%s730_s3 + $0x20] sm:$0xff]   ;;  %v580_v13 = vld [vmem:[%s727_s0 + $0x30] sm:$0xff]   ;;  %v587_v14 = vld [vmem:[%s730_s3 + $0x28] sm:$0xff]  }
  0x12   :  { %510 = vmatmul.mubr.msk.bf16.gmra.mrb[4].mxu0 %vm101_vm0, %v577_v7  ;;  %556 = vmatprep.subr.bf16.mxu1 %v585_v10  ;;  %v581_v15 = vld [vmem:[%s727_s0 + $0x38] sm:$0xff]   ;;  %v588_v16 = vld [vmem:[%s730_s3 + $0x30] sm:$0xff]   ;;  %v447_v18 = vld [vmem:[%s729_s2] ss:$0 sm:$0xff] }
  0x13   :  { %513 = vmatprep.mubr.msk.bf16.mxu0 %vm101_vm0, %v578_v9  ;;  %526 = vmatpush3.bf16.msra.mxu0 %v584_v8  ;;  %v589_v17 = vld [vmem:[%s730_s3 + $0x38] sm:$0xff]  }
  0x14   :  { %527 = vmatprep.subr.bf16.mxu0 %v585_v10 }
  0x15   :  { %564 = vmatpush3.bf16.msra.mxu1 %v585_v10 }
  0x16   :  { %557 = vmatprep.subr.bf16.mxu1 %v586_v12 }
  0x17   :  { %528 = vmatpush3.bf16.msra.mxu0 %v585_v10 }
  0x18   :  { %529 = vmatprep.subr.bf16.mxu0 %v586_v12 }
  0x19   :  { %565 = vmatpush3.bf16.msra.mxu1 %v586_v12 }
  0x1a   :  { %514 = vmatmul.mubr.msk.bf16.gmra.mrb[8].mxu0 %vm101_vm0, %v579_v11  ;;  %558 = vmatprep.subr.bf16.mxu1 %v587_v14  ;;  %v466_v11 = vld [vmem:[%s731_s4] ss:$0 sm:$0xff]  ;;  %s614_s4 = smov [#allocation2]  }
  0x1b   :  { %517 = vmatprep.mubr.msk.bf16.mxu0 %vm101_vm0, %v580_v13  ;;  %530 = vmatpush3.bf16.msra.mxu0 %v586_v12  ;;  %s436_s28 = sshll.u32 %s614_s4, 4  ;;  %s437_s28 = int_to_ptr.vmem [resolvable:$true] %s436_s28 }
  0x1c   :  { %531 = vmatprep.subr.bf16.mxu0 %v587_v14  ;;  %s590_s29 = scalar_lea.vmem %s437_s28, 2048  ;;  %p595_p1 = scmp.lt.s32.totalorder %s437_s28, %s437_s28 }
  0x1d   :  { %566 = vmatpush3.bf16.msra.mxu1 %v587_v14  ;;  %p591_p0 = scmp.ne.s32.totalorder %s437_s28, %s590_s29  ;;  %p596_p2 = scmp.lt.s32.totalorder %s590_s29, %s590_s29 }
  0x1e   :  { %559 = vmatprep.subr.bf16.mxu1 %v588_v16 }
  0x1f   :  { %532 = vmatpush3.bf16.msra.mxu0 %v587_v14  ;;  %p597_p3 = por %p596_p2, %p595_p1 }
  0x20   :  { %533 = vmatprep.subr.bf16.mxu0 %v588_v16 }
  0x21   :  { %567 = vmatpush3.bf16.msra.mxu1 %v588_v16  ;;  %p598_p4 = pnand %p597_p3, %p591_p0 }
  0x22   :  { %518 = vmatmul.mubr.msk.bf16.gmra.mrb[12].mxu0 %vm101_vm0, %v581_v15  ;;  %560 = vmatprep.subr.bf16.mxu1 %v589_v17 }
  0x23   :  { %534 = vmatpush3.bf16.msra.mxu0 %v588_v16 }
  0x24   :  { %535 = vmatprep.subr.bf16.mxu0 %v589_v17 }
  0x25   :  { %568 = vmatpush3.bf16.msra.mxu1 %v589_v17 }
  0x27   :  { %536 = vmatpush3.bf16.msra.mxu0 %v589_v17 }
  0xdd   :  { %v507_v19 = vpop.f32.mrb[0].mxu0 }
  0xde   :  { %v169_v20 = vadd.f32 %v507_v19, %v447_v18  ;;  %v160_v21 = vpop.f32.mrb[1].mxu0 }
  0xdf   :  { %v161_v22 = vadd.f32 %v447_v18, %v160_v21  ;;  %v508_v23 = vpop.f32.mrb[2].mxu0 }
  0xe0   :  { %v172_v24 = vadd.f32 %v508_v23, %v447_v18  ;;  %v163_v25 = vpop.f32.mrb[3].mxu0  ;;  %v225_v27 = vmax.f32 %v169_v20, 0.0 }
  0xe1   :  { %v164_v26 = vadd.f32 %v447_v18, %v163_v25  ;;  %v223_v29 = vmax.f32 %v161_v22, 0.0 }
  0xe2   :  { %v226_v28 = vmax.f32 %v172_v24, 0.0 }
  0xe3   :  { %v224_v30 = vmax.f32 %v164_v26, 0.0 }
  0xe4   :  { %v240_v31 = vpack.c.bf16 %v226_v28, %v225_v27 }
  0xe5   :  { %v239_v32 = vpack.c.bf16 %v224_v30, %v223_v29  ;;  %v511_v33 = vpop.f32.mrb[4].mxu0 }
  0xe6   :  { %v185_v34 = vadd.f32 %v511_v33, %v447_v18  ;;  %v176_v35 = vpop.f32.mrb[5].mxu0 }
  0xe7   :  { %v177_v36 = vadd.f32 %v447_v18, %v176_v35  ;;  %v512_v37 = vpop.f32.mrb[6].mxu0  ;;  %537 = vmatprep.mubr.bf16.mxu0 %v239_v32 }
  0xe8   :  { %v188_v38 = vadd.f32 %v512_v37, %v447_v18  ;;  %v179_v39 = vpop.f32.mrb[7].mxu0  ;;  %538 = vmatmul.mubr.bf16.vlgmr.msra.gmra.mrb[16].mxu0 %v240_v31  ;;  %v229_v41 = vmax.f32 %v185_v34, 0.0 }
  0xe9   :  { %v180_v40 = vadd.f32 %v447_v18, %v179_v39  ;;  %v227_v43 = vmax.f32 %v177_v36, 0.0 }
  0xea   :  { %v230_v42 = vmax.f32 %v188_v38, 0.0 }
  0xeb   :  { %v228_v44 = vmax.f32 %v180_v40, 0.0 }
  0xec   :  { %v242_v45 = vpack.c.bf16 %v230_v42, %v229_v41 }
  0xed   :  { %v515_v46 = vpop.f32.mrb[8].mxu0  ;;  %v241_v47 = vpack.c.bf16 %v228_v44, %v227_v43 }
  0xee   :  { %v201_v48 = vadd.f32 %v515_v46, %v447_v18  ;;  %v192_v49 = vpop.f32.mrb[9].mxu0 }
  0xef   :  { %v193_v50 = vadd.f32 %v447_v18, %v192_v49  ;;  %v516_v51 = vpop.f32.mrb[10].mxu0  ;;  %541 = vmatprep.mubr.bf16.mxu1 %v241_v47 }
  0xf0   :  { %v204_v52 = vadd.f32 %v516_v51, %v447_v18  ;;  %v195_v53 = vpop.f32.mrb[11].mxu0  ;;  %542 = vmatmul.mubr.bf16.vlgmr.msra.gmra.mrb[0].mxu1 %v242_v45  ;;  %v233_v55 = vmax.f32 %v201_v48, 0.0 }
  0xf1   :  { %v196_v54 = vadd.f32 %v447_v18, %v195_v53  ;;  %v231_v57 = vmax.f32 %v193_v50, 0.0 }
  0xf2   :  { %v234_v56 = vmax.f32 %v204_v52, 0.0 }
  0xf3   :  { %v232_v58 = vmax.f32 %v196_v54, 0.0 }
  0xf4   :  { %v244_v59 = vpack.c.bf16 %v234_v56, %v233_v55 }
  0xf5   :  { %v243_v60 = vpack.c.bf16 %v232_v58, %v231_v57  ;;  %v519_v61 = vpop.f32.mrb[12].mxu0 }
  0xf6   :  { %v217_v62 = vadd.f32 %v519_v61, %v447_v18  ;;  %v208_v63 = vpop.f32.mrb[13].mxu0 }
  0xf7   :  { %v209_v0 = vadd.f32 %v447_v18, %v208_v63  ;;  %v520_v1 = vpop.f32.mrb[14].mxu0  ;;  %545 = vmatprep.mubr.bf16.mxu1 %v243_v60 }
  0xf8   :  { %v220_v2 = vadd.f32 %v520_v1, %v447_v18  ;;  %v211_v3 = vpop.f32.mrb[15].mxu0  ;;  %546 = vmatmul.mubr.bf16.gmra.mrb[4].mxu1 %v244_v59  ;;  %v237_v5 = vmax.f32 %v217_v62, 0.0 }
  0xf9   :  { %v212_v4 = vadd.f32 %v447_v18, %v211_v3  ;;  %v235_v7 = vmax.f32 %v209_v0, 0.0 }
  0xfa   :  { %v238_v6 = vmax.f32 %v220_v2, 0.0 }
  0xfb   :  { %v236_v8 = vmax.f32 %v212_v4, 0.0 }
  0xfc   :  { %v246_v9 = vpack.c.bf16 %v238_v6, %v237_v5 }
  0xfd   :  { %v245_v10 = vpack.c.bf16 %v236_v8, %v235_v7 }
  0xff   :  { %549 = vmatprep.mubr.bf16.mxu1 %v245_v10 }
 0x100   :  { %550 = vmatmul.mubr.bf16.gmra.mrb[8].mxu1 %v246_v9 }
 0x1bb   :  { %v539_v12 = vpop.f32.mrb[16].mxu0 }
 0x1bc   :  { %v361_v13 = vadd.f32 %v539_v12, %v466_v11  ;;  %v352_v14 = vpop.f32.mrb[17].mxu0 }
 0x1bd   :  { %v353_v15 = vadd.f32 %v466_v11, %v352_v14  ;;  %v540_v16 = vpop.f32.mrb[18].mxu0 }
 0x1be   :  { %417 = vst [vmem:[#allocation2 + $0x10] sm:$0xff] %v361_v13  ;;  %v364_v17 = vadd.f32 %v540_v16, %v466_v11  ;;  %v355_v18 = vpop.f32.mrb[19].mxu0 }
 0x1bf   :  { %415 = vst [vmem:[#allocation2] sm:$0xff] %v353_v15  ;;  %v356_v19 = vadd.f32 %v466_v11, %v355_v18 }
 0x1c0   :  { %418 = vst [vmem:[#allocation2 + $0x18] sm:$0xff] %v364_v17 }
 0x1c1   :  { %416 = vst [vmem:[#allocation2 + $0x8] sm:$0xff] %v356_v19 }
 0x1c3   :  { %v543_v20 = vpop.f32.mrb[0].mxu1 }
 0x1c4   :  { %v377_v21 = vadd.f32 %v543_v20, %v466_v11  ;;  %v368_v22 = vpop.f32.mrb[1].mxu1 }
 0x1c5   :  { %v369_v23 = vadd.f32 %v466_v11, %v368_v22  ;;  %v544_v24 = vpop.f32.mrb[2].mxu1 }
 0x1c6   :  { %421 = vst [vmem:[#allocation2 + $0x30] sm:$0xff] %v377_v21  ;;  %v380_v25 = vadd.f32 %v544_v24, %v466_v11  ;;  %v371_v26 = vpop.f32.mrb[3].mxu1 }
 0x1c7   :  { %419 = vst [vmem:[#allocation2 + $0x20] sm:$0xff] %v369_v23  ;;  %v372_v27 = vadd.f32 %v466_v11, %v371_v26 }
 0x1c8   :  { %422 = vst [vmem:[#allocation2 + $0x38] sm:$0xff] %v380_v25 }
 0x1c9   :  { %420 = vst [vmem:[#allocation2 + $0x28] sm:$0xff] %v372_v27 }
 0x1cb   :  { %v547_v28 = vpop.f32.mrb[4].mxu1 }
 0x1cc   :  { %v393_v29 = vadd.f32 %v547_v28, %v466_v11  ;;  %v384_v30 = vpop.f32.mrb[5].mxu1 }
 0x1cd   :  { %v385_v31 = vadd.f32 %v466_v11, %v384_v30  ;;  %v548_v32 = vpop.f32.mrb[6].mxu1 }
 0x1ce   :  { %425 = vst [vmem:[#allocation2 + $0x50] sm:$0xff] %v393_v29  ;;  %v396_v33 = vadd.f32 %v548_v32, %v466_v11  ;;  %v387_v34 = vpop.f32.mrb[7].mxu1 }
 0x1cf   :  { %423 = vst [vmem:[#allocation2 + $0x40] sm:$0xff] %v385_v31  ;;  %v388_v35 = vadd.f32 %v466_v11, %v387_v34 }
 0x1d0   :  { %426 = vst [vmem:[#allocation2 + $0x58] sm:$0xff] %v396_v33 }
 0x1d1   :  { %424 = vst [vmem:[#allocation2 + $0x48] sm:$0xff] %v388_v35 }
 0x1d3   :  { %v551_v36 = vpop.f32.mrb[8].mxu1 }
 0x1d4   :  { %v409_v37 = vadd.f32 %v551_v36, %v466_v11  ;;  %v400_v38 = vpop.f32.mrb[9].mxu1 }
 0x1d5   :  { %v401_v39 = vadd.f32 %v466_v11, %v400_v38  ;;  %v552_v40 = vpop.f32.mrb[10].mxu1 }
 0x1d6   :  { %429 = vst [vmem:[#allocation2 + $0x70] sm:$0xff] %v409_v37  ;;  %v412_v41 = vadd.f32 %v552_v40, %v466_v11  ;;  %v403_v42 = vpop.f32.mrb[11].mxu1 }
 0x1d7   :  { %427 = vst [vmem:[#allocation2 + $0x60] sm:$0xff] %v401_v39  ;;  %v404_v43 = vadd.f32 %v466_v11, %v403_v42 }
 0x1d8   :  { %430 = vst [vmem:[#allocation2 + $0x78] sm:$0xff] %v412_v41 }
 0x1d9   :  { %428 = vst [vmem:[#allocation2 + $0x68] sm:$0xff] %v404_v43 }
 0x1da   :  { %601 = shalt.err (!%p598_p4)
}
 0x1db   :  { %s602_s7 = scalar_lea.hbm %s732_s5, 2048 }
 0x1dc   :  { %p603_p5 = scmp.ne.s32.totalorder %s732_s5, %s602_s7  ;;  %p606_p6 = scmp.lt.u32.totalorder %s602_s7, %s732_s5 }
 0x1de   :  { %p608_p7 = pnand %p606_p6, %p603_p5 }
 0x1e0   :  { %611 = shalt.err (!%p608_p7)
}
 0x1e1   :  { %s615_s12 = smov 128   ;;  %s616_s13 = smov 8  }
 0x1e2   :  { %442 = dma.vmem_to_hbm [thread:$0]  %s437_s28, 2048, %s732_s5, [#allocation3], %s615_s12, %s615_s12, %s616_s13  }
 0x1e3   :  { %612 = dma.done.wait [#allocation3], 2048  }
 0x1e4   :  { %613 = vsyncadd [#allocation3], 4294965248 }
 0x1e5   :  { %446 = vsyncpa [#allocation3], 1 }

</bundles_post_ra>
